<compile_context>
chip_gen: v7x
topology: tpu7x:2x2x1
jax: 0.10.0
libtpu: 0.0.40
codegen_flags: <defaults>
</compile_context>

<pallas_src>
import functools
import math

import jax
import jax.numpy as jnp
from jax import lax
from jax.experimental import pallas as pl
from jax.experimental.pallas import tpu as pltpu


# --------------------------------------------------------------------------
# Parameter construction (mirrors ALiBiPositionalEncoding._get_alibi_slopes).
# --------------------------------------------------------------------------
def get_alibi_slopes(num_heads: int) -> jnp.ndarray:
    def pow2_slopes(n):
        start = 2 ** (-(2 ** (-(math.log2(n) - 3))))
        ratio = start
        return [start * ratio ** i for i in range(n)]

    if math.log2(num_heads).is_integer():
        slopes = pow2_slopes(num_heads)
    else:
        closest = 2 ** math.floor(math.log2(num_heads))
        slopes = pow2_slopes(closest)
        slopes = slopes + pow2_slopes(2 * closest)[: num_heads - closest]
        slopes = slopes[:num_heads]
    return jnp.asarray(slopes, dtype=jnp.float32)


# --------------------------------------------------------------------------
# Pallas kernel: one (h_tile, q_tile, k_tile) block of the output.
# --------------------------------------------------------------------------
def _alibi_bias_add_kernel(coeff_ref, scores_ref, out_ref, *,
                           batch_axis, q_axis, k_axis):
    b = pl.program_id(batch_axis)
    qi = pl.program_id(q_axis)
    ki = pl.program_id(k_axis)
    coeff = coeff_ref[b]                                   # scalar from SMEM

    _, tq, tk = out_ref.shape                              # (h_tile, tq, tk)
    qpos = qi * tq + lax.broadcasted_iota(jnp.int32, (tq, tk), 0)
    kpos = ki * tk + lax.broadcasted_iota(jnp.int32, (tq, tk), 1)
    # causal ALiBi bias: (k - q) where k <= q, else 0  ==  min(k - q, 0)
    bias = jnp.minimum(kpos - qpos, 0).astype(jnp.float32) * coeff

    scores = scores_ref[...].astype(jnp.float32)
    out_ref[...] = (scores + bias[None, :, :]).astype(out_ref.dtype)


# --------------------------------------------------------------------------
# Generation-aware VMEM budget & tile chooser.
# --------------------------------------------------------------------------
def _vmem_limit_bytes() -> int:
    cap = None
    try:
        info = pltpu.get_tpu_info()
        cap = getattr(info, "vmem_capacity_bytes", None)
    except Exception:
        cap = None
    if not cap:
        cap = 64 << 20                   # conservative (v7x-sized) fallback
    # Half of physical VMEM, capped at 64 MiB: 64 MiB on v5e/v6e, 32 MiB v7x.
    return int(min(cap // 2, 64 << 20))


def _choose_tiles(Bo, H, Sq, Sk, bytes_per_elem, per_block_budget,
                  min_total_steps=8):
    """Pick (h_tile, q_tile, k_tile): lane-dense, budget-safe, >= ~8 grid steps."""
    min_q = 8 if Sq % 8 == 0 else Sq

    # Head tiling: keep all heads per block unless even a minimal q-slab of all
    # heads overflows the budget -> one head per grid step instead.
    h_tile = H
    if H > 1 and H * min_q * Sk * bytes_per_elem > per_block_budget:
        h_tile = 1

    # K tiling: full Sk (lane-dense, unmasked vst) unless still over budget and
    # Sk can be split into 128-lane multiples.
    k_tile = Sk
    if h_tile * min_q * Sk * bytes_per_elem > per_block_budget and Sk % 128 == 0:
        k_tile = (per_block_budget // (h_tile * min_q * bytes_per_elem) // 128) * 128
        k_tile = int(max(128, min(k_tile, Sk)))
        while k_tile > 128 and Sk % k_tile != 0:
            k_tile -= 128

    # Q tiling: biggest multiple of 8 dividing Sq that fits the budget.
    if Sq % 8 == 0:
        q_tile = (per_block_budget // (h_tile * k_tile * bytes_per_elem) // 8) * 8
        q_tile = int(max(8, min(q_tile, Sq)))
        while q_tile > 8 and Sq % q_tile != 0:
            q_tile -= 8
    else:
        q_tile = Sq

    # Ensure enough grid steps for pipeline overlap / megacore sharding.
    def total_steps(qt):
        return Bo * (H // h_tile) * (Sq // qt) * (Sk // k_tile)

    while Sq % 8 == 0 and q_tile > 8 and total_steps(q_tile) < min_total_steps:
        nxt = q_tile - 8
        while nxt > 8 and Sq % nxt != 0:
            nxt -= 8
        q_tile = nxt

    return h_tile, q_tile, k_tile


# --------------------------------------------------------------------------
# Wrapper: JAX/Pallas equivalent of MathematicalALiBi.forward(x, scores, ids).
# --------------------------------------------------------------------------
def mathematical_alibi_forward(attention_scores,
                               slopes,
                               math_slope_adjustment,
                               operator_bias_scale,
                               token_ids=None,
                               *,
                               keep_input_dtype=False,
                               donate_scores=False):
    B, H, Sq, Sk = attention_scores.shape

    # Output shape follows PyTorch broadcasting: (B,H,Sq,Sk) + (H,1,Sq,Sk).
    out_shape = jnp.broadcast_shapes((B, H, Sq, Sk), (H, 1, Sq, Sk))
    Bo = out_shape[0]
    out_dtype = (attention_scores.dtype if keep_input_dtype
                 else jnp.promote_types(attention_scores.dtype, jnp.float32))

    # Scalar glue (stays in plain JAX): coeff[h] = slope*adjustment*(1+0.1*scale).
    adjusted = (slopes * math_slope_adjustment).astype(jnp.float32)
    if token_ids is not None:
        op_tokens = jnp.asarray([43, 45, 42, 47, 61], dtype=token_ids.dtype)
        any_op = jnp.any(jnp.isin(token_ids, op_tokens))
        factor = jnp.where(any_op,
                           1.0 + 0.1 * operator_bias_scale[0].astype(jnp.float32),
                           jnp.float32(1.0))
    else:
        factor = jnp.float32(1.0)
    coeff = adjusted * factor                              # (H,)
    # Bias head index lands on the OUTPUT batch dim (PyTorch broadcast).
    coeff_bo = jnp.broadcast_to(coeff, (Bo,)).astype(jnp.float32)

    vmem_limit = _vmem_limit_bytes()
    bpe = max(jnp.dtype(attention_scores.dtype).itemsize,
              jnp.dtype(out_dtype).itemsize)
    # 2 input + 2 output double-buffers live at once -> block budget = limit/8.
    h_tile, q_tile, k_tile = _choose_tiles(Bo, H, Sq, Sk, bpe, vmem_limit // 8)
    n_h, n_q, n_k = H // h_tile, Sq // q_tile, Sk // k_tile

    if B == Bo:
        grid = (Bo, n_h, n_q, n_k)
        scores_idx = lambda b, h, q, k, _c: (b, h, q, k)
        out_idx = lambda b, h, q, k, _c: (b, h, q, k)
        batch_axis, q_axis, k_axis = 0, 2, 3
    else:  # B == 1 broadcast: batch innermost -> same input block reused Bo times.
        grid = (n_h, n_q, n_k, Bo)
        scores_idx = lambda h, q, k, b, _c: (0, h, q, k)
        out_idx = lambda h, q, k, b, _c: (b, h, q, k)
        batch_axis, q_axis, k_axis = 3, 1, 2

    kernel = functools.partial(_alibi_bias_add_kernel,
                               batch_axis=batch_axis, q_axis=q_axis,
                               k_axis=k_axis)

    call_kwargs = {}
    if (donate_scores
            and (B, H, Sq, Sk) == tuple(out_shape)
            and attention_scores.dtype == out_dtype):
        # NOTE: clobbers the caller's scores buffer only when it is actually
        # donated (jit donate_argnums / last use); index counts all operands
        # including the scalar-prefetch coeff table.
        call_kwargs["input_output_aliases"] = {1: 0}

    out = pl.pallas_call(
        kernel,
        out_shape=jax.ShapeDtypeStruct(out_shape, out_dtype),
        grid_spec=pltpu.PrefetchScalarGridSpec(
            num_scalar_prefetch=1,
            grid=grid,
            in_specs=[pl.BlockSpec((None, h_tile, q_tile, k_tile), scores_idx)],
            out_specs=pl.BlockSpec((None, h_tile, q_tile, k_tile), out_idx),
        ),
        compiler_params=pltpu.CompilerParams(
            dimension_semantics=("parallel", "parallel", "parallel", "parallel"),
            vmem_limit_bytes=vmem_limit),
        **call_kwargs,
    )(coeff_bo, attention_scores)
    return out


# --------------------------------------------------------------------------
# Pure-JAX reference (direct transcription of the PyTorch forward).
# --------------------------------------------------------------------------
def reference_forward(attention_scores, slopes, math_slope_adjustment,
                      operator_bias_scale, token_ids=None):
    B, H, Sq, Sk = attention_scores.shape
    adjusted = slopes * math_slope_adjustment
    q = jnp.arange(Sq)[:, None]
    k = jnp.arange(Sk)[None, :]
    alibi = jnp.minimum(k - q, 0).astype(jnp.float32)               # (Sq, Sk)
    math_bias = adjusted[:, None, None, None] * alibi[None, None]   # (H,1,Sq,Sk)
    if token_ids is not None:
        op_tokens = jnp.asarray([43, 45, 42, 47, 61], dtype=token_ids.dtype)
        any_op = jnp.any(jnp.isin(token_ids, op_tokens))
        math_bias = jnp.where(any_op,
                              math_bias + 0.1 * math_bias * operator_bias_scale[0],
                              math_bias)
    return attention_scores + math_bias[:H]


if __name__ == "__main__":
    # The PyTorch module adds a (H,1,Sq,Sk) bias to (B,H,Sq,Sk) scores, which
    # only broadcasts if B == H (or B == 1 / H == 1); use B == H == 4.
    d_model, num_heads = 32, 4
    B, H, Sq, Sk, S = 4, 4, 128, 128, 16

    key = jax.random.PRNGKey(0)
    k_scores, k_tokens, k_scores1 = jax.random.split(key, 3)

    attention_scores = jax.random.normal(k_scores, (B, H, Sq, Sk), dtype=jnp.float32)
    token_ids = jax.random.randint(k_tokens, (B, S), 0, 100, dtype=jnp.int32)
    token_ids = token_ids.at[0, 0].set(43)          # ensure an operator token '+'

    slopes = get_alibi_slopes(num_heads)                           # buffer
    math_slope_adjustment = jnp.ones((num_heads,), jnp.float32)    # nn.Parameter(ones)
    operator_bias_scale = jnp.ones((1,), jnp.float32)              # nn.Parameter(ones)

    # Case 1: B == H (standard path).
    ref = reference_forward(attention_scores, slopes, math_slope_adjustment,
                            operator_bias_scale, token_ids)
    out = mathematical_alibi_forward(attention_scores, slopes,
                                     math_slope_adjustment,
                                     operator_bias_scale, token_ids)
    out = jax.block_until_ready(out)
    assert out.shape == ref.shape, (out.shape, ref.shape)
    assert jnp.allclose(out, ref, atol=1e-5, rtol=1e-5), "mismatch vs reference (B==H)"

    # Case 2: B == 1 broadcast path (input tile reused across the output batch).
    scores_b1 = jax.random.normal(k_scores1, (1, H, Sq, Sk), dtype=jnp.float32)
    ref1 = reference_forward(scores_b1, slopes, math_slope_adjustment,
                             operator_bias_scale, token_ids=None)
    out1 = mathematical_alibi_forward(scores_b1, slopes, math_slope_adjustment,
                                      operator_bias_scale, token_ids=None)
    out1 = jax.block_until_ready(out1)
    assert out1.shape == ref1.shape, (out1.shape, ref1.shape)
    assert jnp.allclose(out1, ref1, atol=1e-5, rtol=1e-5), "mismatch vs reference (B==1)"

    print("KERNEL_OK")
</pallas_src>

<mosaic_0001>
module attributes {stable_mosaic.version = 11 : i64} {
  func.func @_alibi_bias_add_kernel(%arg0: i32, %arg1: i32, %arg2: i32, %arg3: i32, %arg4: memref<4xf32, #tpu.memory_space<smem>>, %arg5: memref<1x4x64x128xf32, #tpu.memory_space<vmem>>, %arg6: memref<1x4x64x128xf32, #tpu.memory_space<vmem>>) attributes {dimension_semantics = [#tpu.dimension_semantics<parallel>, #tpu.dimension_semantics<parallel>, #tpu.dimension_semantics<parallel>, #tpu.dimension_semantics<parallel>], iteration_bounds = array<i64: 4, 1, 2, 1>, scalar_prefetch = 1 : i64, scratch_operands = 0 : i64, tpu.core_type = #tpu.core_type<tc>, window_params = [{transform_indices = @transform_0, window_bounds = array<i64: 1, 4, 64, 128>}, {transform_indices = @transform_1, window_bounds = array<i64: 1, 4, 64, 128>}]} {
    %0 = arith.index_cast %arg0 : i32 to index
    %1 = memref.load %arg4[%0] : memref<4xf32, #tpu.memory_space<smem>>
    %c64_i32 = arith.constant 64 : i32
    %2 = arith.muli %arg2, %c64_i32 : i32
    %3 = tpu.iota {dimensions = array<i32: 0>} : vector<64x128xi32>
    %4 = vector.broadcast %2 : i32 to vector<64x128xi32>
    %5 = arith.addi %4, %3 : vector<64x128xi32>
    %c128_i32 = arith.constant 128 : i32
    %6 = arith.muli %arg3, %c128_i32 : i32
    %7 = tpu.iota {dimensions = array<i32: 1>} : vector<64x128xi32>
    %8 = vector.broadcast %6 : i32 to vector<64x128xi32>
    %9 = arith.addi %8, %7 : vector<64x128xi32>
    %10 = arith.subi %9, %5 : vector<64x128xi32>
    %c0_i32 = arith.constant 0 : i32
    %11 = vector.broadcast %c0_i32 : i32 to vector<64x128xi32>
    %12 = arith.minsi %10, %11 : vector<64x128xi32>
    %13 = arith.sitofp %12 : vector<64x128xi32> to vector<64x128xf32>
    %14 = vector.broadcast %1 : f32 to vector<64x128xf32>
    %15 = arith.mulf %13, %14 : vector<64x128xf32>
    %c0 = arith.constant 0 : index
    %c0_0 = arith.constant 0 : index
    %c0_1 = arith.constant 0 : index
    %c0_2 = arith.constant 0 : index
    %16 = vector.load %arg5[%c0, %c0_0, %c0_1, %c0_2] : memref<1x4x64x128xf32, #tpu.memory_space<vmem>>, vector<1x4x64x128xf32>
    %17 = vector.shape_cast %16 : vector<1x4x64x128xf32> to vector<4x64x128xf32>
    %18 = vector.shape_cast %15 : vector<64x128xf32> to vector<1x64x128xf32>
    %19 = vector.broadcast %18 : vector<1x64x128xf32> to vector<4x64x128xf32>
    %20 = arith.addf %17, %19 : vector<4x64x128xf32>
    %c0_3 = arith.constant 0 : index
    %c0_4 = arith.constant 0 : index
    %c0_5 = arith.constant 0 : index
    %c0_6 = arith.constant 0 : index
    %21 = vector.load %arg6[%c0_3, %c0_4, %c0_5, %c0_6] : memref<1x4x64x128xf32, #tpu.memory_space<vmem>>, vector<1x4x64x128xf32>
    %22 = vector.shape_cast %21 : vector<1x4x64x128xf32> to vector<4x64x128xf32>
    %23 = vector.shape_cast %20 : vector<4x64x128xf32> to vector<1x4x64x128xf32>
    tpu.vector_store %arg6[%c0_3, %c0_4, %c0_5, %c0_6], %23 {strides = array<i32>} : memref<1x4x64x128xf32, #tpu.memory_space<vmem>>, vector<1x4x64x128xf32>,
    return
  }
  func.func @transform_0(%arg0: i32, %arg1: i32, %arg2: i32, %arg3: i32, %arg4: memref<4xf32, #tpu.memory_space<smem>>) -> (i32, i32, i32, i32) {
    %c0_i32 = arith.constant 0 : i32
    return %arg0, %arg1, %arg2, %arg3 : i32, i32, i32, i32
  }
  func.func @transform_1(%arg0: i32, %arg1: i32, %arg2: i32, %arg3: i32, %arg4: memref<4xf32, #tpu.memory_space<smem>>) -> (i32, i32, i32, i32) {
    %c0_i32 = arith.constant 0 : i32
    return %arg0, %arg1, %arg2, %arg3 : i32, i32, i32, i32
  }
}

</mosaic_0001>

<bundles_post_ra>
// kernel: tpu_custom_call.1
= control target key start
LH: loop header
LB: loop body
LE: loop exit
PB: predicated region body
PF: predicated region fallthrough
CT: control target
= control target key end

     0   :  { %s1086_s0 = inlined_call_operand.hbm [shape: f32[4], index: 0, kind: input, shape index: {}]   ;;  %s1087_s1 = inlined_call_operand.hbm [shape: f32[4,4,128,128], index: 1, kind: input, shape index: {}]   ;;  %s1088_s2 = inlined_call_operand.hbm [shape: f32[4,4,128,128], index: 2, kind: output, shape index: {}]  }
   0x1   :  { %s660_s11 = scalar_lea.hbm %s1086_s0, 16 }
   0x2   :  { %p661_p0 = scmp.ne.s32.totalorder %s1086_s0, %s660_s11  ;;  %p664_p1 = scmp.lt.u32.totalorder %s660_s11, %s1086_s0 }
   0x4   :  { %p666_p2 = pnand %p664_p1, %p661_p0 }
   0x6   :  { %669 = shalt.err (!%p666_p2)  }
   0x7   :  { %s744_s16 = smov [#allocation3]  }
   0x8   :  { %8 = dma.hbm_to_smem %s1086_s0, 16, %s744_s16, [#allocation2] }
   0x9   :  { %702 = dma.done.wait [#allocation2], 16 }
   0xa   :  { %703 = vsyncadd [#allocation2], 4294967280 }
   0xb   :  { %10 = sfence }
   0xc   :  { %11 = vsyncpa [#allocation5], 0 }
   0xd   :  { %13 = vsyncpa [#allocation5 + $0x1], 0 }
   0xe   :  { %14 = vsyncpa [#allocation6], 0 }
   0xf   :  { %16 = vsyncpa [#allocation6 + $0x1], 0  ;;  %s783_s19 = smov 0   ;;  %s785_s20 = smov 0  }
  0x10   :  { %s787_s21 = smov 0   ;;  %s789_s22 = smov 0  }
  0x11   :  { %s791_s23 = smov 0   ;;  %s793_s24 = smov 0  }
  0x12   :  { %s795_s0 = smov 0   ;;  %s797_s25 = smov 0  }
  0x13 LB: > { %s526_s26 = sadd.s32 4294967295, %s742_s25   ;;  %s527_s27 = sadd.s32 4294967294, %s742_s25   ;;  %s742_s25 = sphi %s797_s25, %s22_s25   ;;  %s738_s0 = sphi %s795_s0, %s1099_s0   ;;  %s734_s24 = sphi %s793_s24, %s1098_s24   ;;  %s730_s23 = sphi %s791_s23, %s1097_s23   ;;  %s726_s22 = sphi %s789_s22, %s1096_s22   ;;  %s722_s21 = sphi %s787_s21, %s1095_s21   ;;  %s718_s20 = sphi %s785_s20, %s1094_s20   ;;  %s714_s19 = sphi %s783_s19, %s1093_s19  }
  0x14   : > { %s40_s28 = sadd.s32 1, %s734_s24  ;;  %s48_s29 = sadd.s32 1, %s738_s0 }
  0x15   : > { %p42_p3 = scmp.ge.s32.totalorder %s40_s28, 2  ;;  %p68_p4 = scmp.ne.s32.totalorder %s722_s21, %s718_s20 }
  0x16   : > { %p69_p5 = scmp.eq.s32.totalorder %s742_s25, 0  ;;  %p74_p8 = scmp.ne.s32.totalorder %s718_s20, %s714_s19 }
  0x17   : > { %s1101_s28 = smov (%p42_p3, %s40_s28), 0  ;;  %s1103_s29 = smov (!%p42_p3, %s48_s29), %s738_s0 }
  0x18   : > { %s55_s30 = ssub.s32 %s734_s24, %s1101_s28  ;;  %p835_p6 = por %p69_p5, %p68_p4 }
  0x19   : > { %p50_p7 = scmp.ge.s32.totalorder %s1103_s29, 4  ;;  %p75_p9 = scmp.eq.s32.totalorder %s526_s26, 0 }
  0x1a   : > { %p104_p10 = scmp.eq.s32.totalorder %s526_s26, 7  ;;  %p110_p13 = scmp.eq.s32.totalorder %s527_s27, 7 }
  0x1b   : > { %s1105_s29 = smov (%p50_p7, %s1103_s29), 0  ;;  %p843_p11 = por %p75_p9, %p74_p8 }
  0x1c   : > { %p847_p12 = por %p104_p10, %p68_p4  ;;  %s52_s6 = ssub.s32 %s738_s0, %s1105_s29 }
  0x1d   : > { %s56_s7 = sor.u32 %s55_s30, %s52_s6  ;;  %s61_s8 = sadd.s32 1, %s722_s21 }
  0x1e   : > { %p59_p0 = scmp.eq.s32.totalorder %s56_s7, 0  ;;  %p854_p1 = por %p110_p13, %p74_p8 }
  0x1f   : > { %p529_p2 = scmp.ge.s32.totalorder %s742_s25, 8 }
  0x20   : > { %s859_s10 = scalar_select %p59_p0, %s722_s21, %s61_s8  }
  0x21   : > { %126 = sbr.rel (%p529_p2) target bundleno = 56 (0x38), region = 16 }
  0x28   : > { %s130_s11 = sand.u32 1, %s722_s21   ;;  %s531_s12 = sshll.u32 %s734_s24, 3 }
  0x29   : > { %s530_s13 = sshll.u32 %s130_s11, 8  ;;  %s532_s14 = sshll.u32 %s738_s0, 6 }
  0x2a   : > { %s144_s15 = sadd.s32 %s532_s14, %s531_s12  ;;  %s134_s16 = scalar_lea.vmem [#allocation4], %s530_s13 }
  0x2b   : > { %s159_s17 = sshll.u32 %s134_s16, 4  ;;  %s533_s18 = sshll.u32 %s144_s15, 7  ;;  %s160_s17 = int_to_ptr.vmem [resolvable:$true] %s159_s17 }
  0x2c   : > { %s562_s26 = scalar_select %p835_p6, [#allocation0], [#allocation12] }
  0x2d   : > { %s745_s27 = smov 2048   ;;  %s746_s6 = smov 1024  }
  0x2e   : > { %563 = sst [smem:[#allocation9]] (%p835_p6), %s745_s27  ;;  %s747_s7 = smov 8  }
  0x2f   : > { %s151_s30 = sld [smem:[%s562_s26]]   ;;  %s748_s8 = smov 128  }
  0x30   : > { %564 = sst [smem:[#allocation9 + $0x1]] (%p835_p6), %s746_s6  ;;  %s146_s14 = scalar_lea.hbm %s1087_s1, %s533_s18 }
  0x31   : > { %565 = sst [smem:[#allocation9 + $0x2]] (%p835_p6), %s747_s7  ;;  %s131_s26 = scalar_lea.sflag [#allocation5], %s130_s11 }
  0x32   : > { %566 = sst [smem:[#allocation9 + $0x3]] (%p835_p6), %s748_s8  ;;  %s749_s27 = smov [#allocation8]  }
  0x33   : > { %567 = sst [smem:[#allocation9 + $0x4]] (%p835_p6), %s748_s8 }
  0x34   : > { %568 = sst [smem:[#allocation9 + $0x5]] (%p835_p6), %s747_s7 }
  0x35   : > { %s534_s15 = sshll.u32 %s151_s30, 26 }
  0x36   : > { %s535_s16 = sadd.s32 134217728, %s534_s15 }
  0x37   : > { %569 = dma.general (%p835_p6), %s146_s14, 4096, %s160_s17, %s131_s26, %s749_s27, [#allocation9], %s535_s16, 0  }
  0x38 PF: > { %p536_p3 = scmp.ge.s32.totalorder %s742_s25, 1  ;;  %p180_p4 = scmp.lt.s32.totalorder %s742_s25, 9 }
  0x3a   : > { %p181_p5 = pnand %p536_p3, %p180_p4 }
  0x3b   : > { %s887_s18 = sand.u32 (!%p181_p5), 1, %s718_s20  }
  0x3c   : > { %184 = sbr.rel (%p181_p5) target bundleno = 113 (0x71), region = 24  ;;  %s537_s30 = sshll.u32 (!%p181_p5), %s887_s18, 8 }
  0x3d   : > { %s187_s6 = scalar_lea.sflag (!%p181_p5), [#allocation5], %s887_s18  ;;  %s893_s11 = scalar_lea.vmem (!%p181_p5), [#allocation4], %s537_s30 }
  0x43   : > { %705 = dma.done.wait (%p843_p11), %s187_s6, 4096  }
  0x44   : > { %707 = vsyncadd (%p843_p11), %s187_s6, 4294963200  ;;  %s539_s3 = sshll.u32 %s726_s22, 6  ;;  %v215_v0 = vlaneseq  ;;  %s213_s17 = sld [smem:[#allocation3 + %s730_s23]]  ;;  %v279_v28 = vld [vmem:[%s893_s11] sm:$0xff]  ;;  %v280_v34 = vld [vmem:[%s893_s11 + $0x8] sm:$0xff] }
  0x45   : > { %v901_v1 = vstv %s539_s3  ;;  %v281_v39 = vld [vmem:[%s893_s11 + $0x10] sm:$0xff]  ;;  %v282_v41 = vld [vmem:[%s893_s11 + $0x18] sm:$0xff]  ;;  %v283_v45 = vld [vmem:[%s893_s11 + $0x20] sm:$0xff]  ;;  %s943_s4 = scalar_lea.vmem [#allocation7], %s537_s30  ;;  %s376_s7 = scalar_lea.sflag [#allocation6], %s887_s18 }
  0x46   : > { %v216_v2 = vshrl.u32 %v215_v0, 7  ;;  %v903_v3 = vand.u32 127, %v215_v0  ;;  %v284_v47 = vld [vmem:[%s893_s11 + $0x28] sm:$0xff]  ;;  %v287_v48 = vld [vmem:[%s893_s11 + $0x40] sm:$0xff]  ;;  %v285_v52 = vld [vmem:[%s893_s11 + $0x30] sm:$0xff] }
  0x47   : > { %v288_v53 = vld [vmem:[%s893_s11 + $0x48] sm:$0xff]  ;;  %v289_v54 = vld [vmem:[%s893_s11 + $0x50] sm:$0xff]  ;;  %v290_v59 = vld [vmem:[%s893_s11 + $0x58] sm:$0xff] }
  0x48   : > { %v225_v4 = vadd.s32 %v901_v1, %v216_v2  ;;  %v217_v5 = vadd.s32 8, %v216_v2  ;;  %v218_v6 = vadd.s32 16, %v216_v2  ;;  %v219_v7 = vadd.s32 24, %v216_v2  ;;  %v291_v60 = vld [vmem:[%s893_s11 + $0x60] sm:$0xff]  ;;  %v292_v61 = vld [vmem:[%s893_s11 + $0x68] sm:$0xff] }
  0x49   : > { %v220_v8 = vadd.s32 32, %v216_v2  ;;  %v221_v9 = vadd.s32 40, %v216_v2  ;;  %v222_v10 = vadd.s32 48, %v216_v2  ;;  %v223_v11 = vadd.s32 56, %v216_v2 }
  0x4a   : > { %v238_v12 = vsub.s32 %v903_v3, %v225_v4  ;;  %v226_v13 = vadd.s32 %v901_v1, %v217_v5  ;;  %v227_v14 = vadd.s32 %v901_v1, %v218_v6  ;;  %v228_v15 = vadd.s32 %v901_v1, %v219_v7  ;;  %v293_v4 = vld [vmem:[%s893_s11 + $0x70] sm:$0xff]  ;;  %v295_v5 = vld [vmem:[%s893_s11 + $0x80] sm:$0xff] }
  0x4b   : > { %v910_v16 = vstv %s213_s17  ;;  %v229_v17 = vadd.s32 %v901_v1, %v220_v8  ;;  %v230_v18 = vadd.s32 %v901_v1, %v221_v9  ;;  %v231_v19 = vadd.s32 %v901_v1, %v222_v10  ;;  %v297_v10 = vld [vmem:[%s893_s11 + $0x90] sm:$0xff] }
  0x4c   : > { %vm246_vm0 = vcmp.lt.s32.totalorder %v238_v12, 0  ;;  %v540_v20 = vcvt.s32.f32 %v238_v12  ;;  %v239_v21 = vsub.s32 %v903_v3, %v226_v13  ;;  %v240_v22 = vsub.s32 %v903_v3, %v227_v14  ;;  %v299_v12 = vld [vmem:[%s893_s11 + $0xa0] sm:$0xff] }
  0x4d   : > { %v241_v23 = vsub.s32 %v903_v3, %v228_v15  ;;  %v242_v24 = vsub.s32 %v903_v3, %v229_v17  ;;  %v243_v25 = vsub.s32 %v903_v3, %v230_v18  ;;  %v244_v26 = vsub.s32 %v903_v3, %v231_v19  ;;  %v300_v17 = vld [vmem:[%s893_s11 + $0xa8] sm:$0xff]  ;;  %v301_v18 = vld [vmem:[%s893_s11 + $0xb0] sm:$0xff]  ;;  %v303_v19 = vld [vmem:[%s893_s11 + $0xc0] sm:$0xff] }
  0x4e   : > { %v541_v27 = vsel %vm246_vm0, %v540_v20, 0.0  ;;  %vm248_vm1 = vcmp.lt.s32.totalorder %v239_v21, 0  ;;  %v542_v29 = vcvt.s32.f32 %v239_v21  ;;  %vm250_vm2 = vcmp.lt.s32.totalorder %v240_v22, 0 }
  0x4f   : > { %v923_v30 = vmul.f32 %v541_v27, %v910_v16  ;;  %v544_v31 = vcvt.s32.f32 %v240_v22  ;;  %vm252_vm3 = vcmp.lt.s32.totalorder %v241_v23, 0  ;;  %v546_v32 = vcvt.s32.f32 %v241_v23  ;;  %v286_v22 = vld [vmem:[%s893_s11 + $0x38] sm:$0xff] }
  0x50   : > { %v543_v33 = vsel %vm248_vm1, %v542_v29, 0.0  ;;  %vm254_vm4 = vcmp.lt.s32.totalorder %v242_v24, 0  ;;  %v548_v35 = vcvt.s32.f32 %v242_v24  ;;  %vm256_vm5 = vcmp.lt.s32.totalorder %v243_v25, 0  ;;  %v304_v24 = vld [vmem:[%s893_s11 + $0xc8] sm:$0xff] }
  0x51   : > { %v311_v36 = vadd.f32 %v279_v28, %v923_v30  ;;  %v928_v37 = vmul.f32 %v543_v33, %v910_v16  ;;  %v545_v38 = vsel %vm250_vm2, %v544_v31, 0.0  ;;  %v547_v40 = vsel %vm252_vm3, %v546_v32, 0.0  ;;  %v307_v32 = vld [vmem:[%s893_s11 + $0xe0] sm:$0xff]  ;;  %v308_v33 = vld [vmem:[%s893_s11 + $0xe8] sm:$0xff] }
  0x52   : > { %v933_v42 = vmul.f32 %v545_v38, %v910_v16  ;;  %v936_v43 = vmul.f32 %v547_v40, %v910_v16  ;;  %v549_v44 = vsel %vm254_vm4, %v548_v35, 0.0  ;;  %v550_v46 = vcvt.s32.f32 %v243_v25  ;;  %v305_v25 = vld [vmem:[%s893_s11 + $0xd0] sm:$0xff] }
  0x53   : > { %343 = vst [vmem:[%s943_s4] sm:$0xff] %v311_v36  ;;  %v312_v49 = vadd.f32 %v280_v34, %v928_v37  ;;  %v948_v50 = vmul.f32 %v549_v44, %v910_v16  ;;  %vm258_vm6 = vcmp.lt.s32.totalorder %v244_v26, 0  ;;  %v552_v51 = vcvt.s32.f32 %v244_v26  ;;  %v306_v26 = vld [vmem:[%s893_s11 + $0xd8] sm:$0xff]  ;;  %v309_v34 = vld [vmem:[%s893_s11 + $0xf0] sm:$0xff] }
  0x54   : > { %v313_v55 = vadd.f32 %v281_v39, %v933_v42  ;;  %v314_v56 = vadd.f32 %v282_v41, %v936_v43  ;;  %v551_v57 = vsel %vm256_vm5, %v550_v46, 0.0  ;;  %v232_v58 = vadd.s32 %v901_v1, %v223_v11  ;;  %v296_v1 = vld [vmem:[%s893_s11 + $0x88] sm:$0xff]  ;;  %v298_v11 = vld [vmem:[%s893_s11 + $0x98] sm:$0xff] }
  0x55   : > { %344 = vst [vmem:[%s943_s4 + $0x8] sm:$0xff] %v312_v49  ;;  %v315_v62 = vadd.f32 %v283_v45, %v948_v50  ;;  %v963_v63 = vmul.f32 %v551_v57, %v910_v16  ;;  %v553_v0 = vsel %vm258_vm6, %v552_v51, 0.0  ;;  %v319_v2 = vadd.f32 %v287_v48, %v923_v30  ;;  %v294_v36 = vld [vmem:[%s893_s11 + $0x78] sm:$0xff] }
  0x56   : > { %345 = vst [vmem:[%s943_s4 + $0x10] sm:$0xff] %v313_v55  ;;  %346 = vst [vmem:[%s943_s4 + $0x18] sm:$0xff] %v314_v56  ;;  %v277_v6 = vmul.f32 %v553_v0, %v910_v16  ;;  %v245_v7 = vsub.s32 %v903_v3, %v232_v58  ;;  %v320_v8 = vadd.f32 %v288_v53, %v928_v37  ;;  %v302_v41 = vld [vmem:[%s893_s11 + $0xb8] sm:$0xff] }
  0x57   : > { %v321_v9 = vadd.f32 %v289_v54, %v933_v42  ;;  %347 = vst [vmem:[%s943_s4 + $0x20] sm:$0xff] %v315_v62  ;;  %v316_v13 = vadd.f32 %v284_v47, %v963_v63  ;;  %351 = vst [vmem:[%s943_s4 + $0x40] sm:$0xff] %v319_v2  ;;  %v322_v14 = vadd.f32 %v290_v59, %v936_v43  ;;  %v310_v44 = vld [vmem:[%s893_s11 + $0xf8] sm:$0xff] }
  0x58   : > { %v323_v3 = vadd.f32 %v291_v60, %v948_v50  ;;  %v324_v15 = vadd.f32 %v292_v61, %v963_v63  ;;  %v317_v20 = vadd.f32 %v285_v52, %v277_v6  ;;  %vm260_vm7 = vcmp.lt.s32.totalorder %v245_v7, 0  ;;  %352 = vst [vmem:[%s943_s4 + $0x48] sm:$0xff] %v320_v8 }
  0x59   : > { %v554_v21 = vcvt.s32.f32 %v245_v7  ;;  %353 = vst [vmem:[%s943_s4 + $0x50] sm:$0xff] %v321_v9  ;;  %v325_v23 = vadd.f32 %v293_v4, %v277_v6  ;;  %348 = vst [vmem:[%s943_s4 + $0x28] sm:$0xff] %v316_v13  ;;  %v327_v27 = vadd.f32 %v295_v5, %v923_v30  ;;  %v328_v28 = vadd.f32 %v296_v1, %v928_v37 }
  0x5a   : > { %354 = vst [vmem:[%s943_s4 + $0x58] sm:$0xff] %v322_v14  ;;  %355 = vst [vmem:[%s943_s4 + $0x60] sm:$0xff] %v323_v3  ;;  %v329_v29 = vadd.f32 %v297_v10, %v933_v42  ;;  %v330_v31 = vadd.f32 %v298_v11, %v936_v43  ;;  %v331_v38 = vadd.f32 %v299_v12, %v948_v50 }
  0x5b   : > { %356 = vst [vmem:[%s943_s4 + $0x68] sm:$0xff] %v324_v15  ;;  %349 = vst [vmem:[%s943_s4 + $0x30] sm:$0xff] %v317_v20  ;;  %v555_v35 = vsel %vm260_vm7, %v554_v21, 0.0  ;;  %v332_v39 = vadd.f32 %v300_v17, %v963_v63  ;;  %v333_v40 = vadd.f32 %v301_v18, %v277_v6  ;;  %v335_v46 = vadd.f32 %v303_v19, %v923_v30 }
  0x5c   : > { %357 = vst [vmem:[%s943_s4 + $0x70] sm:$0xff] %v325_v23  ;;  %v278_v45 = vmul.f32 %v555_v35, %v910_v16  ;;  %359 = vst [vmem:[%s943_s4 + $0x80] sm:$0xff] %v327_v27  ;;  %v336_v47 = vadd.f32 %v304_v24, %v928_v37  ;;  %v337_v48 = vadd.f32 %v305_v25, %v933_v42 }
  0x5d   : > { %360 = vst [vmem:[%s943_s4 + $0x88] sm:$0xff] %v328_v28  ;;  %361 = vst [vmem:[%s943_s4 + $0x90] sm:$0xff] %v329_v29  ;;  %v338_v16 = vadd.f32 %v306_v26, %v936_v43  ;;  %v339_v49 = vadd.f32 %v307_v32, %v948_v50  ;;  %v340_v30 = vadd.f32 %v308_v33, %v963_v63 }
  0x5e   : > { %362 = vst [vmem:[%s943_s4 + $0x98] sm:$0xff] %v330_v31  ;;  %363 = vst [vmem:[%s943_s4 + $0xa0] sm:$0xff] %v331_v38  ;;  %v341_v37 = vadd.f32 %v309_v34, %v277_v6  ;;  %v318_v51 = vadd.f32 %v286_v22, %v278_v45  ;;  %v326_v42 = vadd.f32 %v294_v36, %v278_v45 }
  0x5f   : > { %364 = vst [vmem:[%s943_s4 + $0xa8] sm:$0xff] %v332_v39  ;;  %365 = vst [vmem:[%s943_s4 + $0xb0] sm:$0xff] %v333_v40  ;;  %v334_v52 = vadd.f32 %v302_v41, %v278_v45  ;;  %v342_v53 = vadd.f32 %v310_v44, %v278_v45 }
  0x60   : > { %367 = vst [vmem:[%s943_s4 + $0xc0] sm:$0xff] %v335_v46  ;;  %368 = vst [vmem:[%s943_s4 + $0xc8] sm:$0xff] %v336_v47 }
  0x61   : > { %369 = vst [vmem:[%s943_s4 + $0xd0] sm:$0xff] %v337_v48  ;;  %370 = vst [vmem:[%s943_s4 + $0xd8] sm:$0xff] %v338_v16 }
  0x62   : > { %371 = vst [vmem:[%s943_s4 + $0xe0] sm:$0xff] %v339_v49  ;;  %372 = vst [vmem:[%s943_s4 + $0xe8] sm:$0xff] %v340_v30 }
  0x63   : > { %373 = vst [vmem:[%s943_s4 + $0xf0] sm:$0xff] %v341_v37  ;;  %350 = vst [vmem:[%s943_s4 + $0x38] sm:$0xff] %v318_v51 }
  0x64   : > { %358 = vst [vmem:[%s943_s4 + $0x78] sm:$0xff] %v326_v42  ;;  %366 = vst [vmem:[%s943_s4 + $0xb8] sm:$0xff] %v334_v52 }
  0x65   : > { %374 = vst [vmem:[%s943_s4 + $0xf8] sm:$0xff] %v342_v53 }
  0x66   : > { %s557_s8 = sshll.u32 %s726_s22, 3  ;;  %s558_s12 = sshll.u32 %s730_s23, 6 }
  0x67   : > { %s392_s13 = sadd.s32 %s558_s12, %s557_s8  ;;  %s411_s14 = sshll.u32 %s943_s4, 4  ;;  %s412_s14 = int_to_ptr.vmem [resolvable:$true] %s411_s14 }
  0x68   : > { %s559_s15 = sshll.u32 %s392_s13, 7  ;;  %s750_s18 = smov 1024  }
  0x69   : > { %s394_s27 = scalar_lea.hbm %s1088_s2, %s559_s15  ;;  %571 = sst [smem:[#allocation11]] (%p847_p12), %s750_s18 }
  0x6a   : > { %s751_s30 = smov 2048   ;;  %s752_s6 = smov 8  }
  0x6b   : > { %572 = sst [smem:[#allocation11 + $0x1]] (%p847_p12), %s751_s30  ;;  %s753_s22 = smov 128  }
  0x6c   : > { %573 = sst [smem:[#allocation11 + $0x2]] (%p847_p12), %s752_s6  ;;  %s754_s23 = smov [#allocation10]  }
  0x6d   : > { %574 = sst [smem:[#allocation11 + $0x3]] (%p847_p12), %s753_s22  ;;  %s755_s11 = smov 0  }
  0x6e   : > { %575 = sst [smem:[#allocation11 + $0x4]] (%p847_p12), %s753_s22 }
  0x6f   : > { %576 = sst [smem:[#allocation11 + $0x5]] (%p847_p12), %s752_s6 }
  0x70   : > { %577 = dma.general (%p847_p12), %s412_s14, 4096, %s394_s27, %s376_s7, %s754_s23, [#allocation11], %s755_s11, 0  }
  0x71 PF: > { %p583_p6 = scmp.ge.s32.totalorder %s742_s25, 2  ;;  %s439_s3 = sand.u32 1, %s714_s19  }
  0x72   : > { %s440_s17 = scalar_lea.sflag [#allocation6], %s439_s3 }
  0x73   : > { %p580_p7 = pnand %p583_p6, %p854_p1 }
  0x75   : > { %709 = dma.done.wait (!%p580_p7), %s440_s17, 4096  }
  0x76   : > { %711 = vsyncadd (!%p580_p7), %s440_s17, 4294963200  ;;  %s22_s25 = sadd.s32 1, %s742_s25   ;;  %s1093_s19 = smov %s718_s20 }
  0x77   : > { %p19_p8 = scmp.ge.s32.totalorder %s22_s25, 10   ;;  %s1094_s20 = smov %s722_s21 }
  0x78   : > { %s1095_s21 = smov %s859_s10  ;;  %s1096_s22 = smov %s734_s24 }
  0x79   : > { %s1097_s23 = smov %s738_s0  ;;  %s1098_s24 = smov %s1101_s28 }
  0x7a   : > { %s1099_s0 = smov %s1105_s29  ;;  %21 = sbr.rel (!%p19_p8) target bundleno = 19 (0x13), region = 79 }
  0x81   :  { %445 = vsyncpa [#allocation5], 1 }
  0x82   :  { %447 = vsyncpa [#allocation5 + $0x1], 1 }
  0x83   :  { %448 = vsyncpa [#allocation6], 1 }
  0x84   :  { %450 = vsyncpa [#allocation6 + $0x1], 1 }

</bundles_post_ra>
